<compile_context>
chip_gen: v7x
topology: tpu7x:2x2x1
jax: 0.10.0
libtpu: 0.0.40
codegen_flags: <defaults>
</compile_context>

<pallas_src>
import functools

import jax
import jax.numpy as jnp
import numpy as np
from jax.experimental import pallas as pl
from jax.experimental.pallas import tpu as pltpu

LANE = 128            # lane width of the packed weight slab / output stores
SUBLANE = 8           # sublane tile (batch rows, slab rows)
MAX_BATCH_TILE = 128  # batch rows per grid step (larger tiles spill gx to VMEM)


def _round_up(n, m):
    return ((n + m - 1) // m) * m


def _slab_layout(H):
    """Static row offsets of each parameter inside the packed weight slab."""
    Fp = _round_up(2 + H, SUBLANE)            # padded cat(x, c) feature width
    W = _round_up(max(3 * H, 2), LANE)        # slab / gate lane width (>= 128)
    Hp = _round_up(H, SUBLANE)
    off, r = {}, 0
    off["w_xc"] = r;  r += Fp                 # (2+H, 3H) composed input->gates weight
    off["w_hh"] = r;  r += Hp                 # (H, 3H)   fused hidden->gates weight
    off["b_gx"] = r;  r += SUBLANE            # (1, 3H)   all input-side biases + b_hr, b_hz
    off["b_hn"] = r;  r += SUBLANE            # (1, H)    b_hn (stays inside r * (...))
    off["w_out"] = r; r += Hp                 # (H, 2)    out_layer weight (lane padded)
    off["b_out"] = r; r += SUBLANE            # (1, 2)
    return off, r, W, Fp


def decoder_kernel(xc_ref, h0_ref, slab_ref, out_ref, hid_ref):
    # xc_ref: (T, bt, Fp) time-major cat(x, c);  h0_ref: (bt, H);
    # slab_ref: (rows, W) packed weights;  out_ref: (T, bt, W);  hid_ref: (bt, H).
    T, bt, Fp = xc_ref.shape
    H = h0_ref.shape[-1]
    off, _, W, _ = _slab_layout(H)

    # ---- weights: ONE slab DMA, static sublane-aligned slices ----
    w_xc = slab_ref[0:Fp, :]                               # (Fp, W)
    w_hh = slab_ref[off["w_hh"]:off["w_hh"] + H, :]        # (H, W)
    w_out = slab_ref[off["w_out"]:off["w_out"] + H, :]     # (H, W)
    b_gx = slab_ref[off["b_gx"]:off["b_gx"] + 1, :]        # (1, W)
    # biases used inside the recurrence: pre-broadcast ONCE (hoisted out of loop)
    b_hn = jnp.broadcast_to(
        slab_ref[off["b_hn"]:off["b_hn"] + 1, :][:, :H], (bt, H))
    b_out = jnp.broadcast_to(
        slab_ref[off["b_out"]:off["b_out"] + 1, :], (bt, W))

    # ---- hoisted input-side gate pre-activations: one batched matmul ----
    # TODO(synk): training-mode Dropout(0.2) mask not reproduced (inference only).
    xc = xc_ref[...].reshape(T * bt, Fp)
    gx = jnp.dot(xc, w_xc, preferred_element_type=jnp.float32) + b_gx   # (T*bt, W)

    # ---- GRU recurrence (serial critical path): one matmul + gate math per step;
    #      h and gx stay in vregs, static sublane-aligned slices, T fully unrolled ----
    h = h0_ref[...]                                        # (bt, H)
    for t in range(T):
        gx_t = gx[t * bt:(t + 1) * bt, :]
        gh = jnp.dot(h, w_hh, preferred_element_type=jnp.float32)       # (bt, W)
        rz = jax.nn.sigmoid(gx_t[:, :2 * H] + gh[:, :2 * H])
        r = rz[:, :H]
        z = rz[:, H:2 * H]
        n = jnp.tanh(gx_t[:, 2 * H:3 * H] + r * (gh[:, 2 * H:3 * H] + b_hn))
        h = n + z * (h - n)                                # == (1-z)*n + z*h_prev
        # out_layer: off the h-chain, lane-dense 128-wide store
        o = jnp.dot(h, w_out, preferred_element_type=jnp.float32) + b_out
        out_ref[t] = jnp.maximum(o, 0.0)
    hid_ref[...] = h


def prepare_params(params):
    """One-time fusion / composition / lane-padding / packing of raw weights."""
    (w_emb, b_emb, w_in, b_in, w_ih, b_ih, w_hh, b_hh, w_out, b_out) = params
    H = w_emb.shape[1]
    hi = jax.lax.Precision.HIGHEST

    w_in_e, w_in_c = w_in[:H], w_in[H:]                                # emb half / c half
    w_ih_f = jnp.concatenate([w_ih[0], w_ih[1], w_ih[2]], axis=-1)     # (H, 3H) (r,z,n)
    b_ih_f = jnp.concatenate([b_ih[0], b_ih[1], b_ih[2]], axis=-1)     # (1, 3H)
    w_hh_f = jnp.concatenate([w_hh[0], w_hh[1], w_hh[2]], axis=-1)     # (H, 3H)

    # Compose the affine chain embed -> in_layer -> input gate projection.
    a_x = jnp.dot(jnp.dot(w_emb, w_in_e, precision=hi), w_ih_f, precision=hi)   # (2, 3H)
    a_c = jnp.dot(w_in_c, w_ih_f, precision=hi)                                 # (H, 3H)
    w_xc = jnp.concatenate([a_x, a_c], axis=0)                                  # (2+H, 3H)
    b_gx = (jnp.dot(jnp.dot(b_emb, w_in_e, precision=hi) + b_in, w_ih_f, precision=hi)
            + b_ih_f
            + jnp.concatenate([b_hh[0], b_hh[1], jnp.zeros_like(b_hh[2])], axis=-1))
    b_hn = b_hh[2]                                                              # (1, H)

    off, rows, W, _ = _slab_layout(H)
    slab = jnp.zeros((rows, W), jnp.float32)
    slab = slab.at[0:2 + H, 0:3 * H].set(w_xc)
    slab = slab.at[off["w_hh"]:off["w_hh"] + H, 0:3 * H].set(w_hh_f)
    slab = slab.at[off["b_gx"], 0:3 * H].set(b_gx[0])
    slab = slab.at[off["b_hn"], 0:H].set(b_hn[0])
    slab = slab.at[off["w_out"]:off["w_out"] + H, 0:w_out.shape[1]].set(w_out)
    slab = slab.at[off["b_out"], 0:b_out.shape[1]].set(b_out[0])
    return slab


@jax.jit
def decoder_forward(x, h, c, slab):
    """x:(B,T,2)  h:(1,B,H)  c:(B,T,H)  slab=prepare_params(...)  ->  ((B,T,2), (1,B,H))"""
    B, T, _ = x.shape
    H = h.shape[-1]
    off, rows, W, Fp = _slab_layout(H)

    bt = min(_round_up(B, SUBLANE), MAX_BATCH_TILE)        # batch tile (multiple of 8)
    Bp = _round_up(B, bt)
    nb = Bp // bt

    # Activation prep (concat + pad + time-major transpose), fused under this jit.
    xc = jnp.concatenate([x, c], axis=-1)                  # (B, T, 2+H)
    xc = jnp.pad(xc, ((0, Bp - B), (0, 0), (0, Fp - (2 + H))))
    xc_tm = jnp.transpose(xc, (1, 0, 2))                   # (T, Bp, Fp)
    h0 = jnp.pad(h[0], ((0, Bp - B), (0, 0)))              # (Bp, H)

    out_tm, hid_p = pl.pallas_call(
        decoder_kernel,
        out_shape=(jax.ShapeDtypeStruct((T, Bp, W), jnp.float32),
                   jax.ShapeDtypeStruct((Bp, H), jnp.float32)),
        grid=(nb,),
        in_specs=[pl.BlockSpec((T, bt, Fp), lambda i: (0, i, 0)),
                  pl.BlockSpec((bt, H), lambda i: (i, 0)),
                  pl.BlockSpec((rows, W), lambda i: (0, 0))],
        out_specs=(pl.BlockSpec((T, bt, W), lambda i: (0, i, 0)),
                   pl.BlockSpec((bt, H), lambda i: (i, 0))),
        compiler_params=pltpu.CompilerParams(
            dimension_semantics=("parallel",)),
    )(xc_tm, h0, slab)

    out = jnp.transpose(out_tm[:, :B, :2], (1, 0, 2))      # (B, T, 2)
    hid = hid_p[:B][None]                                  # (1, B, H)
    return out, hid


def make_params(key, H):
    """Deterministic synthetic parameters (shapes mirror the PyTorch module)."""
    ks = jax.random.split(key, 10)
    s = 0.2
    w_emb = s * jax.random.normal(ks[0], (2, H), jnp.float32)        # embed Linear(2,H)
    b_emb = s * jax.random.normal(ks[1], (1, H), jnp.float32)
    w_in = s * jax.random.normal(ks[2], (2 * H, H), jnp.float32)     # in_layer Linear(2H,H)
    b_in = s * jax.random.normal(ks[3], (1, H), jnp.float32)
    w_ih = s * jax.random.normal(ks[4], (3, H, H), jnp.float32)      # GRU W_ih (r,z,n)
    b_ih = s * jax.random.normal(ks[5], (3, 1, H), jnp.float32)
    w_hh = s * jax.random.normal(ks[6], (3, H, H), jnp.float32)      # GRU W_hh (r,z,n)
    b_hh = s * jax.random.normal(ks[7], (3, 1, H), jnp.float32)
    w_out = s * jax.random.normal(ks[8], (H, 2), jnp.float32)        # out_layer Linear(H,2)
    b_out = s * jax.random.normal(ks[9], (1, 2), jnp.float32)
    return (w_emb, b_emb, w_in, b_in, w_ih, b_ih, w_hh, b_hh, w_out, b_out)


def decoder_ref(x, h, c, params):
    """float64 numpy reference mirroring the PyTorch forward (unfused weights)."""
    p = [np.asarray(t, np.float64) for t in params]
    (w_emb, b_emb, w_in, b_in, w_ih, b_ih, w_hh, b_hh, w_out, b_out) = p
    x = np.asarray(x, np.float64)
    h = np.asarray(h, np.float64)
    c = np.asarray(c, np.float64)

    def sigmoid(v):
        return 1.0 / (1.0 + np.exp(-v))

    emb = x @ w_emb + b_emb                                # Dropout -> identity (eval)
    in_x = np.concatenate([emb, c], axis=-1) @ w_in + b_in
    h_t = h[0]
    outs = []
    for t in range(x.shape[1]):
        xt = in_x[:, t, :]
        r = sigmoid(xt @ w_ih[0] + b_ih[0] + h_t @ w_hh[0] + b_hh[0])
        z = sigmoid(xt @ w_ih[1] + b_ih[1] + h_t @ w_hh[1] + b_hh[1])
        n = np.tanh(xt @ w_ih[2] + b_ih[2] + r * (h_t @ w_hh[2] + b_hh[2]))
        h_t = (1.0 - z) * n + z * h_t
        outs.append(h_t)
    h_all = np.stack(outs, axis=1)
    out = np.maximum(h_all @ w_out + b_out, 0.0)
    return out, h_t[None]


if __name__ == "__main__":
    B, T, H = 2, 8, 32
    key = jax.random.PRNGKey(0)
    kx, kh, kc, kp = jax.random.split(key, 4)

    x = jax.random.normal(kx, (B, T, 2), jnp.float32)
    h = jax.random.normal(kh, (1, B, H), jnp.float32)
    c = jax.random.normal(kc, (B, T, H), jnp.float32)
    params = make_params(kp, H)

    slab = jax.block_until_ready(prepare_params(params))   # one-time weight packing

    out, hid = jax.block_until_ready(decoder_forward(x, h, c, slab))

    out_ref, hid_ref = decoder_ref(x, h, c, params)
    assert out.shape == (B, T, 2) and hid.shape == (1, B, H)
    np.testing.assert_allclose(np.asarray(out), out_ref, rtol=2e-5, atol=2e-5)
    np.testing.assert_allclose(np.asarray(hid), hid_ref, rtol=2e-5, atol=2e-5)
    print("KERNEL_OK")
</pallas_src>

<mosaic_0001>
module attributes {stable_mosaic.version = 11 : i64} {
  func.func @decoder_kernel(%arg0: i32, %arg1: memref<8x8x40xf32, #tpu.memory_space<vmem>>, %arg2: memref<8x32xf32, #tpu.memory_space<vmem>>, %arg3: memref<128x128xf32, #tpu.memory_space<vmem>>, %arg4: memref<8x8x128xf32, #tpu.memory_space<vmem>>, %arg5: memref<8x32xf32, #tpu.memory_space<vmem>>) attributes {dimension_semantics = [#tpu.dimension_semantics<parallel>], iteration_bounds = array<i64: 1>, scalar_prefetch = 0 : i64, scratch_operands = 0 : i64, tpu.core_type = #tpu.core_type<tc>, window_params = [{transform_indices = @transform_0, window_bounds = array<i64: 8, 8, 40>}, {transform_indices = @transform_1, window_bounds = array<i64: 8, 32>}, {pipeline_mode = #tpu.pipeline_mode<synchronous>, transform_indices = @transform_2, window_bounds = array<i64: 128, 128>}, {transform_indices = @transform_3, window_bounds = array<i64: 8, 8, 128>}, {transform_indices = @transform_4, window_bounds = array<i64: 8, 32>}]} {
    %c0 = arith.constant 0 : index
    %c0_0 = arith.constant 0 : index
    %0 = vector.load %arg3[%c0, %c0_0] : memref<128x128xf32, #tpu.memory_space<vmem>>, vector<40x128xf32>
    %c40 = arith.constant 40 : index
    %c0_1 = arith.constant 0 : index
    %1 = vector.load %arg3[%c40, %c0_1] : memref<128x128xf32, #tpu.memory_space<vmem>>, vector<32x128xf32>
    %c88 = arith.constant 88 : index
    %c0_2 = arith.constant 0 : index
    %2 = vector.load %arg3[%c88, %c0_2] : memref<128x128xf32, #tpu.memory_space<vmem>>, vector<32x128xf32>
    %c72 = arith.constant 72 : index
    %c0_3 = arith.constant 0 : index
    %3 = vector.load %arg3[%c72, %c0_3] : memref<128x128xf32, #tpu.memory_space<vmem>>, vector<1x128xf32>
    %c80 = arith.constant 80 : index
    %c0_4 = arith.constant 0 : index
    %4 = vector.load %arg3[%c80, %c0_4] : memref<128x128xf32, #tpu.memory_space<vmem>>, vector<1x128xf32>
    %5 = vector.extract_strided_slice %4 {offsets = [0, 0], sizes = [1, 32], strides = [1, 1]} : vector<1x128xf32> to vector<1x32xf32>
    %6 = vector.shape_cast %5 : vector<1x32xf32> to vector<1x32xf32>
    %7 = vector.broadcast %6 : vector<1x32xf32> to vector<8x32xf32>
    %c120 = arith.constant 120 : index
    %c0_5 = arith.constant 0 : index
    %8 = vector.load %arg3[%c120, %c0_5] : memref<128x128xf32, #tpu.memory_space<vmem>>, vector<1x128xf32>
    %9 = vector.shape_cast %8 : vector<1x128xf32> to vector<1x128xf32>
    %10 = vector.broadcast %9 : vector<1x128xf32> to vector<8x128xf32>
    %c0_6 = arith.constant 0 : index
    %c0_7 = arith.constant 0 : index
    %c0_8 = arith.constant 0 : index
    %11 = vector.load %arg1[%c0_6, %c0_7, %c0_8] : memref<8x8x40xf32, #tpu.memory_space<vmem>>, vector<8x8x40xf32>
    %12 = vector.shape_cast %11 : vector<8x8x40xf32> to vector<64x40xf32>
    %cst = arith.constant dense<0.000000e+00> : vector<64x128xf32>
    %13 = tpu.matmul %12, %0, %cst {dimension_numbers = #tpu.dot_dimension_numbers<[1], [0], [0], [1], [0, 0, 1, 1], [], []>} : vector<64x40xf32>, vector<40x128xf32>, vector<64x128xf32> -> vector<64x128xf32>
    %14 = vector.broadcast %3 : vector<1x128xf32> to vector<64x128xf32>
    %15 = arith.addf %13, %14 : vector<64x128xf32>
    %c0_9 = arith.constant 0 : index
    %c0_10 = arith.constant 0 : index
    %16 = vector.load %arg2[%c0_9, %c0_10] : memref<8x32xf32, #tpu.memory_space<vmem>>, vector<8x32xf32>
    %17 = vector.extract_strided_slice %15 {offsets = [0, 0], sizes = [8, 128], strides = [1, 1]} : vector<64x128xf32> to vector<8x128xf32>
    %cst_11 = arith.constant dense<0.000000e+00> : vector<8x128xf32>
    %18 = tpu.matmul %16, %1, %cst_11 {dimension_numbers = #tpu.dot_dimension_numbers<[1], [0], [0], [1], [0, 0, 1, 1], [], []>} : vector<8x32xf32>, vector<32x128xf32>, vector<8x128xf32> -> vector<8x128xf32>
    %19 = vector.extract_strided_slice %17 {offsets = [0, 0], sizes = [8, 64], strides = [1, 1]} : vector<8x128xf32> to vector<8x64xf32>
    %20 = vector.extract_strided_slice %18 {offsets = [0, 0], sizes = [8, 64], strides = [1, 1]} : vector<8x128xf32> to vector<8x64xf32>
    %21 = arith.addf %19, %20 : vector<8x64xf32>
    %22 = arith.negf %21 : vector<8x64xf32>
    %23 = math.exp %22 : vector<8x64xf32>
    %cst_12 = arith.constant 1.000000e+00 : f32
    %24 = vector.broadcast %cst_12 : f32 to vector<8x64xf32>
    %25 = arith.addf %24, %23 : vector<8x64xf32>
    %26 = arith.divf %24, %25 : vector<8x64xf32>
    %27 = vector.extract_strided_slice %26 {offsets = [0, 0], sizes = [8, 32], strides = [1, 1]} : vector<8x64xf32> to vector<8x32xf32>
    %28 = vector.extract_strided_slice %26 {offsets = [0, 32], sizes = [8, 32], strides = [1, 1]} : vector<8x64xf32> to vector<8x32xf32>
    %29 = vector.extract_strided_slice %17 {offsets = [0, 64], sizes = [8, 32], strides = [1, 1]} : vector<8x128xf32> to vector<8x32xf32>
    %30 = vector.extract_strided_slice %18 {offsets = [0, 64], sizes = [8, 32], strides = [1, 1]} : vector<8x128xf32> to vector<8x32xf32>
    %31 = arith.addf %30, %7 : vector<8x32xf32>
    %32 = arith.mulf %27, %31 : vector<8x32xf32>
    %33 = arith.addf %29, %32 : vector<8x32xf32>
    %34 = math.tanh %33 : vector<8x32xf32>
    %35 = arith.subf %16, %34 : vector<8x32xf32>
    %36 = arith.mulf %28, %35 : vector<8x32xf32>
    %37 = arith.addf %34, %36 : vector<8x32xf32>
    %cst_13 = arith.constant dense<0.000000e+00> : vector<8x128xf32>
    %38 = tpu.matmul %37, %2, %cst_13 {dimension_numbers = #tpu.dot_dimension_numbers<[1], [0], [0], [1], [0, 0, 1, 1], [], []>} : vector<8x32xf32>, vector<32x128xf32>, vector<8x128xf32> -> vector<8x128xf32>
    %39 = arith.addf %38, %10 : vector<8x128xf32>
    %cst_14 = arith.constant 0.000000e+00 : f32
    %40 = vector.broadcast %cst_14 : f32 to vector<8x128xf32>
    %41 = arith.maximumf %39, %40 : vector<8x128xf32>
    %c0_15 = arith.constant 0 : index
    %c0_16 = arith.constant 0 : index
    %c0_17 = arith.constant 0 : index
    %42 = vector.load %arg4[%c0_15, %c0_16, %c0_17] : memref<8x8x128xf32, #tpu.memory_space<vmem>>, vector<1x8x128xf32>
    %43 = vector.shape_cast %42 : vector<1x8x128xf32> to vector<8x128xf32>
    %44 = vector.shape_cast %41 : vector<8x128xf32> to vector<1x8x128xf32>
    tpu.vector_store %arg4[%c0_15, %c0_16, %c0_17], %44 {strides = array<i32>} : memref<8x8x128xf32, #tpu.memory_space<vmem>>, vector<1x8x128xf32>,
    %45 = vector.extract_strided_slice %15 {offsets = [8, 0], sizes = [8, 128], strides = [1, 1]} : vector<64x128xf32> to vector<8x128xf32>
    %cst_18 = arith.constant dense<0.000000e+00> : vector<8x128xf32>
    %46 = tpu.matmul %37, %1, %cst_18 {dimension_numbers = #tpu.dot_dimension_numbers<[1], [0], [0], [1], [0, 0, 1, 1], [], []>} : vector<8x32xf32>, vector<32x128xf32>, vector<8x128xf32> -> vector<8x128xf32>
    %47 = vector.extract_strided_slice %45 {offsets = [0, 0], sizes = [8, 64], strides = [1, 1]} : vector<8x128xf32> to vector<8x64xf32>
    %48 = vector.extract_strided_slice %46 {offsets = [0, 0], sizes = [8, 64], strides = [1, 1]} : vector<8x128xf32> to vector<8x64xf32>
    %49 = arith.addf %47, %48 : vector<8x64xf32>
    %50 = arith.negf %49 : vector<8x64xf32>
    %51 = math.exp %50 : vector<8x64xf32>
    %cst_19 = arith.constant 1.000000e+00 : f32
    %52 = vector.broadcast %cst_19 : f32 to vector<8x64xf32>
    %53 = arith.addf %52, %51 : vector<8x64xf32>
    %54 = arith.divf %52, %53 : vector<8x64xf32>
    %55 = vector.extract_strided_slice %54 {offsets = [0, 0], sizes = [8, 32], strides = [1, 1]} : vector<8x64xf32> to vector<8x32xf32>
    %56 = vector.extract_strided_slice %54 {offsets = [0, 32], sizes = [8, 32], strides = [1, 1]} : vector<8x64xf32> to vector<8x32xf32>
    %57 = vector.extract_strided_slice %45 {offsets = [0, 64], sizes = [8, 32], strides = [1, 1]} : vector<8x128xf32> to vector<8x32xf32>
    %58 = vector.extract_strided_slice %46 {offsets = [0, 64], sizes = [8, 32], strides = [1, 1]} : vector<8x128xf32> to vector<8x32xf32>
    %59 = arith.addf %58, %7 : vector<8x32xf32>
    %60 = arith.mulf %55, %59 : vector<8x32xf32>
    %61 = arith.addf %57, %60 : vector<8x32xf32>
    %62 = math.tanh %61 : vector<8x32xf32>
    %63 = arith.subf %37, %62 : vector<8x32xf32>
    %64 = arith.mulf %56, %63 : vector<8x32xf32>
    %65 = arith.addf %62, %64 : vector<8x32xf32>
    %cst_20 = arith.constant dense<0.000000e+00> : vector<8x128xf32>
    %66 = tpu.matmul %65, %2, %cst_20 {dimension_numbers = #tpu.dot_dimension_numbers<[1], [0], [0], [1], [0, 0, 1, 1], [], []>} : vector<8x32xf32>, vector<32x128xf32>, vector<8x128xf32> -> vector<8x128xf32>
    %67 = arith.addf %66, %10 : vector<8x128xf32>
    %cst_21 = arith.constant 0.000000e+00 : f32
    %68 = vector.broadcast %cst_21 : f32 to vector<8x128xf32>
    %69 = arith.maximumf %67, %68 : vector<8x128xf32>
    %c1 = arith.constant 1 : index
    %c0_22 = arith.constant 0 : index
    %c0_23 = arith.constant 0 : index
    %70 = vector.load %arg4[%c1, %c0_22, %c0_23] : memref<8x8x128xf32, #tpu.memory_space<vmem>>, vector<1x8x128xf32>
    %71 = vector.shape_cast %70 : vector<1x8x128xf32> to vector<8x128xf32>
    %72 = vector.shape_cast %69 : vector<8x128xf32> to vector<1x8x128xf32>
    tpu.vector_store %arg4[%c1, %c0_22, %c0_23], %72 {strides = array<i32>} : memref<8x8x128xf32, #tpu.memory_space<vmem>>, vector<1x8x128xf32>,
    %73 = vector.extract_strided_slice %15 {offsets = [16, 0], sizes = [8, 128], strides = [1, 1]} : vector<64x128xf32> to vector<8x128xf32>
    %cst_24 = arith.constant dense<0.000000e+00> : vector<8x128xf32>
    %74 = tpu.matmul %65, %1, %cst_24 {dimension_numbers = #tpu.dot_dimension_numbers<[1], [0], [0], [1], [0, 0, 1, 1], [], []>} : vector<8x32xf32>, vector<32x128xf32>, vector<8x128xf32> -> vector<8x128xf32>
    %75 = vector.extract_strided_slice %73 {offsets = [0, 0], sizes = [8, 64], strides = [1, 1]} : vector<8x128xf32> to vector<8x64xf32>
    %76 = vector.extract_strided_slice %74 {offsets = [0, 0], sizes = [8, 64], strides = [1, 1]} : vector<8x128xf32> to vector<8x64xf32>
    %77 = arith.addf %75, %76 : vector<8x64xf32>
    %78 = arith.negf %77 : vector<8x64xf32>
    %79 = math.exp %78 : vector<8x64xf32>
    %cst_25 = arith.constant 1.000000e+00 : f32
    %80 = vector.broadcast %cst_25 : f32 to vector<8x64xf32>
    %81 = arith.addf %80, %79 : vector<8x64xf32>
    %82 = arith.divf %80, %81 : vector<8x64xf32>
    %83 = vector.extract_strided_slice %82 {offsets = [0, 0], sizes = [8, 32], strides = [1, 1]} : vector<8x64xf32> to vector<8x32xf32>
    %84 = vector.extract_strided_slice %82 {offsets = [0, 32], sizes = [8, 32], strides = [1, 1]} : vector<8x64xf32> to vector<8x32xf32>
    %85 = vector.extract_strided_slice %73 {offsets = [0, 64], sizes = [8, 32], strides = [1, 1]} : vector<8x128xf32> to vector<8x32xf32>
    %86 = vector.extract_strided_slice %74 {offsets = [0, 64], sizes = [8, 32], strides = [1, 1]} : vector<8x128xf32> to vector<8x32xf32>
    %87 = arith.addf %86, %7 : vector<8x32xf32>
    %88 = arith.mulf %83, %87 : vector<8x32xf32>
    %89 = arith.addf %85, %88 : vector<8x32xf32>
    %90 = math.tanh %89 : vector<8x32xf32>
    %91 = arith.subf %65, %90 : vector<8x32xf32>
    %92 = arith.mulf %84, %91 : vector<8x32xf32>
    %93 = arith.addf %90, %92 : vector<8x32xf32>
    %cst_26 = arith.constant dense<0.000000e+00> : vector<8x128xf32>
    %94 = tpu.matmul %93, %2, %cst_26 {dimension_numbers = #tpu.dot_dimension_numbers<[1], [0], [0], [1], [0, 0, 1, 1], [], []>} : vector<8x32xf32>, vector<32x128xf32>, vector<8x128xf32> -> vector<8x128xf32>
    %95 = arith.addf %94, %10 : vector<8x128xf32>
    %cst_27 = arith.constant 0.000000e+00 : f32
    %96 = vector.broadcast %cst_27 : f32 to vector<8x128xf32>
    %97 = arith.maximumf %95, %96 : vector<8x128xf32>
    %c2 = arith.constant 2 : index
    %c0_28 = arith.constant 0 : index
    %c0_29 = arith.constant 0 : index
    %98 = vector.load %arg4[%c2, %c0_28, %c0_29] : memref<8x8x128xf32, #tpu.memory_space<vmem>>, vector<1x8x128xf32>
    %99 = vector.shape_cast %98 : vector<1x8x128xf32> to vector<8x128xf32>
    %100 = vector.shape_cast %97 : vector<8x128xf32> to vector<1x8x128xf32>
    tpu.vector_store %arg4[%c2, %c0_28, %c0_29], %100 {strides = array<i32>} : memref<8x8x128xf32, #tpu.memory_space<vmem>>, vector<1x8x128xf32>,
    %101 = vector.extract_strided_slice %15 {offsets = [24, 0], sizes = [8, 128], strides = [1, 1]} : vector<64x128xf32> to vector<8x128xf32>
    %cst_30 = arith.constant dense<0.000000e+00> : vector<8x128xf32>
    %102 = tpu.matmul %93, %1, %cst_30 {dimension_numbers = #tpu.dot_dimension_numbers<[1], [0], [0], [1], [0, 0, 1, 1], [], []>} : vector<8x32xf32>, vector<32x128xf32>, vector<8x128xf32> -> vector<8x128xf32>
    %103 = vector.extract_strided_slice %101 {offsets = [0, 0], sizes = [8, 64], strides = [1, 1]} : vector<8x128xf32> to vector<8x64xf32>
    %104 = vector.extract_strided_slice %102 {offsets = [0, 0], sizes = [8, 64], strides = [1, 1]} : vector<8x128xf32> to vector<8x64xf32>
    %105 = arith.addf %103, %104 : vector<8x64xf32>
    %106 = arith.negf %105 : vector<8x64xf32>
    %107 = math.exp %106 : vector<8x64xf32>
    %cst_31 = arith.constant 1.000000e+00 : f32
    %108 = vector.broadcast %cst_31 : f32 to vector<8x64xf32>
    %109 = arith.addf %108, %107 : vector<8x64xf32>
    %110 = arith.divf %108, %109 : vector<8x64xf32>
    %111 = vector.extract_strided_slice %110 {offsets = [0, 0], sizes = [8, 32], strides = [1, 1]} : vector<8x64xf32> to vector<8x32xf32>
    %112 = vector.extract_strided_slice %110 {offsets = [0, 32], sizes = [8, 32], strides = [1, 1]} : vector<8x64xf32> to vector<8x32xf32>
    %113 = vector.extract_strided_slice %101 {offsets = [0, 64], sizes = [8, 32], strides = [1, 1]} : vector<8x128xf32> to vector<8x32xf32>
    %114 = vector.extract_strided_slice %102 {offsets = [0, 64], sizes = [8, 32], strides = [1, 1]} : vector<8x128xf32> to vector<8x32xf32>
    %115 = arith.addf %114, %7 : vector<8x32xf32>
    %116 = arith.mulf %111, %115 : vector<8x32xf32>
    %117 = arith.addf %113, %116 : vector<8x32xf32>
    %118 = math.tanh %117 : vector<8x32xf32>
    %119 = arith.subf %93, %118 : vector<8x32xf32>
    %120 = arith.mulf %112, %119 : vector<8x32xf32>
    %121 = arith.addf %118, %120 : vector<8x32xf32>
    %cst_32 = arith.constant dense<0.000000e+00> : vector<8x128xf32>
    %122 = tpu.matmul %121, %2, %cst_32 {dimension_numbers = #tpu.dot_dimension_numbers<[1], [0], [0], [1], [0, 0, 1, 1], [], []>} : vector<8x32xf32>, vector<32x128xf32>, vector<8x128xf32> -> vector<8x128xf32>
    %123 = arith.addf %122, %10 : vector<8x128xf32>
    %cst_33 = arith.constant 0.000000e+00 : f32
    %124 = vector.broadcast %cst_33 : f32 to vector<8x128xf32>
    %125 = arith.maximumf %123, %124 : vector<8x128xf32>
    %c3 = arith.constant 3 : index
    %c0_34 = arith.constant 0 : index
    %c0_35 = arith.constant 0 : index
    %126 = vector.load %arg4[%c3, %c0_34, %c0_35] : memref<8x8x128xf32, #tpu.memory_space<vmem>>, vector<1x8x128xf32>
    %127 = vector.shape_cast %126 : vector<1x8x128xf32> to vector<8x128xf32>
    %128 = vector.shape_cast %125 : vector<8x128xf32> to vector<1x8x128xf32>
    tpu.vector_store %arg4[%c3, %c0_34, %c0_35], %128 {strides = array<i32>} : memref<8x8x128xf32, #tpu.memory_space<vmem>>, vector<1x8x128xf32>,
    %129 = vector.extract_strided_slice %15 {offsets = [32, 0], sizes = [8, 128], strides = [1, 1]} : vector<64x128xf32> to vector<8x128xf32>
    %cst_36 = arith.constant dense<0.000000e+00> : vector<8x128xf32>
    %130 = tpu.matmul %121, %1, %cst_36 {dimension_numbers = #tpu.dot_dimension_numbers<[1], [0], [0], [1], [0, 0, 1, 1], [], []>} : vector<8x32xf32>, vector<32x128xf32>, vector<8x128xf32> -> vector<8x128xf32>
    %131 = vector.extract_strided_slice %129 {offsets = [0, 0], sizes = [8, 64], strides = [1, 1]} : vector<8x128xf32> to vector<8x64xf32>
    %132 = vector.extract_strided_slice %130 {offsets = [0, 0], sizes = [8, 64], strides = [1, 1]} : vector<8x128xf32> to vector<8x64xf32>
    %133 = arith.addf %131, %132 : vector<8x64xf32>
    %134 = arith.negf %133 : vector<8x64xf32>
    %135 = math.exp %134 : vector<8x64xf32>
    %cst_37 = arith.constant 1.000000e+00 : f32
    %136 = vector.broadcast %cst_37 : f32 to vector<8x64xf32>
    %137 = arith.addf %136, %135 : vector<8x64xf32>
    %138 = arith.divf %136, %137 : vector<8x64xf32>
    %139 = vector.extract_strided_slice %138 {offsets = [0, 0], sizes = [8, 32], strides = [1, 1]} : vector<8x64xf32> to vector<8x32xf32>
    %140 = vector.extract_strided_slice %138 {offsets = [0, 32], sizes = [8, 32], strides = [1, 1]} : vector<8x64xf32> to vector<8x32xf32>
    %141 = vector.extract_strided_slice %129 {offsets = [0, 64], sizes = [8, 32], strides = [1, 1]} : vector<8x128xf32> to vector<8x32xf32>
    %142 = vector.extract_strided_slice %130 {offsets = [0, 64], sizes = [8, 32], strides = [1, 1]} : vector<8x128xf32> to vector<8x32xf32>
    %143 = arith.addf %142, %7 : vector<8x32xf32>
    %144 = arith.mulf %139, %143 : vector<8x32xf32>
    %145 = arith.addf %141, %144 : vector<8x32xf32>
    %146 = math.tanh %145 : vector<8x32xf32>
    %147 = arith.subf %121, %146 : vector<8x32xf32>
    %148 = arith.mulf %140, %147 : vector<8x32xf32>
    %149 = arith.addf %146, %148 : vector<8x32xf32>
    %cst_38 = arith.constant dense<0.000000e+00> : vector<8x128xf32>
    %150 = tpu.matmul %149, %2, %cst_38 {dimension_numbers = #tpu.dot_dimension_numbers<[1], [0], [0], [1], [0, 0, 1, 1], [], []>} : vector<8x32xf32>, vector<32x128xf32>, vector<8x128xf32> -> vector<8x128xf32>
    %151 = arith.addf %150, %10 : vector<8x128xf32>
    %cst_39 = arith.constant 0.000000e+00 : f32
    %152 = vector.broadcast %cst_39 : f32 to vector<8x128xf32>
    %153 = arith.maximumf %151, %152 : vector<8x128xf32>
    %c4 = arith.constant 4 : index
    %c0_40 = arith.constant 0 : index
    %c0_41 = arith.constant 0 : index
    %154 = vector.load %arg4[%c4, %c0_40, %c0_41] : memref<8x8x128xf32, #tpu.memory_space<vmem>>, vector<1x8x128xf32>
    %155 = vector.shape_cast %154 : vector<1x8x128xf32> to vector<8x128xf32>
    %156 = vector.shape_cast %153 : vector<8x128xf32> to vector<1x8x128xf32>
    tpu.vector_store %arg4[%c4, %c0_40, %c0_41], %156 {strides = array<i32>} : memref<8x8x128xf32, #tpu.memory_space<vmem>>, vector<1x8x128xf32>,
    %157 = vector.extract_strided_slice %15 {offsets = [40, 0], sizes = [8, 128], strides = [1, 1]} : vector<64x128xf32> to vector<8x128xf32>
    %cst_42 = arith.constant dense<0.000000e+00> : vector<8x128xf32>
    %158 = tpu.matmul %149, %1, %cst_42 {dimension_numbers = #tpu.dot_dimension_numbers<[1], [0], [0], [1], [0, 0, 1, 1], [], []>} : vector<8x32xf32>, vector<32x128xf32>, vector<8x128xf32> -> vector<8x128xf32>
    %159 = vector.extract_strided_slice %157 {offsets = [0, 0], sizes = [8, 64], strides = [1, 1]} : vector<8x128xf32> to vector<8x64xf32>
    %160 = vector.extract_strided_slice %158 {offsets = [0, 0], sizes = [8, 64], strides = [1, 1]} : vector<8x128xf32> to vector<8x64xf32>
    %161 = arith.addf %159, %160 : vector<8x64xf32>
    %162 = arith.negf %161 : vector<8x64xf32>
    %163 = math.exp %162 : vector<8x64xf32>
    %cst_43 = arith.constant 1.000000e+00 : f32
    %164 = vector.broadcast %cst_43 : f32 to vector<8x64xf32>
    %165 = arith.addf %164, %163 : vector<8x64xf32>
    %166 = arith.divf %164, %165 : vector<8x64xf32>
    %167 = vector.extract_strided_slice %166 {offsets = [0, 0], sizes = [8, 32], strides = [1, 1]} : vector<8x64xf32> to vector<8x32xf32>
    %168 = vector.extract_strided_slice %166 {offsets = [0, 32], sizes = [8, 32], strides = [1, 1]} : vector<8x64xf32> to vector<8x32xf32>
    %169 = vector.extract_strided_slice %157 {offsets = [0, 64], sizes = [8, 32], strides = [1, 1]} : vector<8x128xf32> to vector<8x32xf32>
    %170 = vector.extract_strided_slice %158 {offsets = [0, 64], sizes = [8, 32], strides = [1, 1]} : vector<8x128xf32> to vector<8x32xf32>
    %171 = arith.addf %170, %7 : vector<8x32xf32>
    %172 = arith.mulf %167, %171 : vector<8x32xf32>
    %173 = arith.addf %169, %172 : vector<8x32xf32>
    %174 = math.tanh %173 : vector<8x32xf32>
    %175 = arith.subf %149, %174 : vector<8x32xf32>
    %176 = arith.mulf %168, %175 : vector<8x32xf32>
    %177 = arith.addf %174, %176 : vector<8x32xf32>
    %cst_44 = arith.constant dense<0.000000e+00> : vector<8x128xf32>
    %178 = tpu.matmul %177, %2, %cst_44 {dimension_numbers = #tpu.dot_dimension_numbers<[1], [0], [0], [1], [0, 0, 1, 1], [], []>} : vector<8x32xf32>, vector<32x128xf32>, vector<8x128xf32> -> vector<8x128xf32>
    %179 = arith.addf %178, %10 : vector<8x128xf32>
    %cst_45 = arith.constant 0.000000e+00 : f32
    %180 = vector.broadcast %cst_45 : f32 to vector<8x128xf32>
    %181 = arith.maximumf %179, %180 : vector<8x128xf32>
    %c5 = arith.constant 5 : index
    %c0_46 = arith.constant 0 : index
    %c0_47 = arith.constant 0 : index
    %182 = vector.load %arg4[%c5, %c0_46, %c0_47] : memref<8x8x128xf32, #tpu.memory_space<vmem>>, vector<1x8x128xf32>
    %183 = vector.shape_cast %182 : vector<1x8x128xf32> to vector<8x128xf32>
    %184 = vector.shape_cast %181 : vector<8x128xf32> to vector<1x8x128xf32>
    tpu.vector_store %arg4[%c5, %c0_46, %c0_47], %184 {strides = array<i32>} : memref<8x8x128xf32, #tpu.memory_space<vmem>>, vector<1x8x128xf32>,
    %185 = vector.extract_strided_slice %15 {offsets = [48, 0], sizes = [8, 128], strides = [1, 1]} : vector<64x128xf32> to vector<8x128xf32>
    %cst_48 = arith.constant dense<0.000000e+00> : vector<8x128xf32>
    %186 = tpu.matmul %177, %1, %cst_48 {dimension_numbers = #tpu.dot_dimension_numbers<[1], [0], [0], [1], [0, 0, 1, 1], [], []>} : vector<8x32xf32>, vector<32x128xf32>, vector<8x128xf32> -> vector<8x128xf32>
    %187 = vector.extract_strided_slice %185 {offsets = [0, 0], sizes = [8, 64], strides = [1, 1]} : vector<8x128xf32> to vector<8x64xf32>
    %188 = vector.extract_strided_slice %186 {offsets = [0, 0], sizes = [8, 64], strides = [1, 1]} : vector<8x128xf32> to vector<8x64xf32>
    %189 = arith.addf %187, %188 : vector<8x64xf32>
    %190 = arith.negf %189 : vector<8x64xf32>
    %191 = math.exp %190 : vector<8x64xf32>
    %cst_49 = arith.constant 1.000000e+00 : f32
    %192 = vector.broadcast %cst_49 : f32 to vector<8x64xf32>
    %193 = arith.addf %192, %191 : vector<8x64xf32>
    %194 = arith.divf %192, %193 : vector<8x64xf32>
    %195 = vector.extract_strided_slice %194 {offsets = [0, 0], sizes = [8, 32], strides = [1, 1]} : vector<8x64xf32> to vector<8x32xf32>
    %196 = vector.extract_strided_slice %194 {offsets = [0, 32], sizes = [8, 32], strides = [1, 1]} : vector<8x64xf32> to vector<8x32xf32>
    %197 = vector.extract_strided_slice %185 {offsets = [0, 64], sizes = [8, 32], strides = [1, 1]} : vector<8x128xf32> to vector<8x32xf32>
    %198 = vector.extract_strided_slice %186 {offsets = [0, 64], sizes = [8, 32], strides = [1, 1]} : vector<8x128xf32> to vector<8x32xf32>
    %199 = arith.addf %198, %7 : vector<8x32xf32>
    %200 = arith.mulf %195, %199 : vector<8x32xf32>
    %201 = arith.addf %197, %200 : vector<8x32xf32>
    %202 = math.tanh %201 : vector<8x32xf32>
    %203 = arith.subf %177, %202 : vector<8x32xf32>
    %204 = arith.mulf %196, %203 : vector<8x32xf32>
    %205 = arith.addf %202, %204 : vector<8x32xf32>
    %cst_50 = arith.constant dense<0.000000e+00> : vector<8x128xf32>
    %206 = tpu.matmul %205, %2, %cst_50 {dimension_numbers = #tpu.dot_dimension_numbers<[1], [0], [0], [1], [0, 0, 1, 1], [], []>} : vector<8x32xf32>, vector<32x128xf32>, vector<8x128xf32> -> vector<8x128xf32>
    %207 = arith.addf %206, %10 : vector<8x128xf32>
    %cst_51 = arith.constant 0.000000e+00 : f32
    %208 = vector.broadcast %cst_51 : f32 to vector<8x128xf32>
    %209 = arith.maximumf %207, %208 : vector<8x128xf32>
    %c6 = arith.constant 6 : index
    %c0_52 = arith.constant 0 : index
    %c0_53 = arith.constant 0 : index
    %210 = vector.load %arg4[%c6, %c0_52, %c0_53] : memref<8x8x128xf32, #tpu.memory_space<vmem>>, vector<1x8x128xf32>
    %211 = vector.shape_cast %210 : vector<1x8x128xf32> to vector<8x128xf32>
    %212 = vector.shape_cast %209 : vector<8x128xf32> to vector<1x8x128xf32>
    tpu.vector_store %arg4[%c6, %c0_52, %c0_53], %212 {strides = array<i32>} : memref<8x8x128xf32, #tpu.memory_space<vmem>>, vector<1x8x128xf32>,
    %213 = vector.extract_strided_slice %15 {offsets = [56, 0], sizes = [8, 128], strides = [1, 1]} : vector<64x128xf32> to vector<8x128xf32>
    %cst_54 = arith.constant dense<0.000000e+00> : vector<8x128xf32>
    %214 = tpu.matmul %205, %1, %cst_54 {dimension_numbers = #tpu.dot_dimension_numbers<[1], [0], [0], [1], [0, 0, 1, 1], [], []>} : vector<8x32xf32>, vector<32x128xf32>, vector<8x128xf32> -> vector<8x128xf32>
    %215 = vector.extract_strided_slice %213 {offsets = [0, 0], sizes = [8, 64], strides = [1, 1]} : vector<8x128xf32> to vector<8x64xf32>
    %216 = vector.extract_strided_slice %214 {offsets = [0, 0], sizes = [8, 64], strides = [1, 1]} : vector<8x128xf32> to vector<8x64xf32>
    %217 = arith.addf %215, %216 : vector<8x64xf32>
    %218 = arith.negf %217 : vector<8x64xf32>
    %219 = math.exp %218 : vector<8x64xf32>
    %cst_55 = arith.constant 1.000000e+00 : f32
    %220 = vector.broadcast %cst_55 : f32 to vector<8x64xf32>
    %221 = arith.addf %220, %219 : vector<8x64xf32>
    %222 = arith.divf %220, %221 : vector<8x64xf32>
    %223 = vector.extract_strided_slice %222 {offsets = [0, 0], sizes = [8, 32], strides = [1, 1]} : vector<8x64xf32> to vector<8x32xf32>
    %224 = vector.extract_strided_slice %222 {offsets = [0, 32], sizes = [8, 32], strides = [1, 1]} : vector<8x64xf32> to vector<8x32xf32>
    %225 = vector.extract_strided_slice %213 {offsets = [0, 64], sizes = [8, 32], strides = [1, 1]} : vector<8x128xf32> to vector<8x32xf32>
    %226 = vector.extract_strided_slice %214 {offsets = [0, 64], sizes = [8, 32], strides = [1, 1]} : vector<8x128xf32> to vector<8x32xf32>
    %227 = arith.addf %226, %7 : vector<8x32xf32>
    %228 = arith.mulf %223, %227 : vector<8x32xf32>
    %229 = arith.addf %225, %228 : vector<8x32xf32>
    %230 = math.tanh %229 : vector<8x32xf32>
    %231 = arith.subf %205, %230 : vector<8x32xf32>
    %232 = arith.mulf %224, %231 : vector<8x32xf32>
    %233 = arith.addf %230, %232 : vector<8x32xf32>
    %cst_56 = arith.constant dense<0.000000e+00> : vector<8x128xf32>
    %234 = tpu.matmul %233, %2, %cst_56 {dimension_numbers = #tpu.dot_dimension_numbers<[1], [0], [0], [1], [0, 0, 1, 1], [], []>} : vector<8x32xf32>, vector<32x128xf32>, vector<8x128xf32> -> vector<8x128xf32>
    %235 = arith.addf %234, %10 : vector<8x128xf32>
    %cst_57 = arith.constant 0.000000e+00 : f32
    %236 = vector.broadcast %cst_57 : f32 to vector<8x128xf32>
    %237 = arith.maximumf %235, %236 : vector<8x128xf32>
    %c7 = arith.constant 7 : index
    %c0_58 = arith.constant 0 : index
    %c0_59 = arith.constant 0 : index
    %238 = vector.load %arg4[%c7, %c0_58, %c0_59] : memref<8x8x128xf32, #tpu.memory_space<vmem>>, vector<1x8x128xf32>
    %239 = vector.shape_cast %238 : vector<1x8x128xf32> to vector<8x128xf32>
    %240 = vector.shape_cast %237 : vector<8x128xf32> to vector<1x8x128xf32>
    tpu.vector_store %arg4[%c7, %c0_58, %c0_59], %240 {strides = array<i32>} : memref<8x8x128xf32, #tpu.memory_space<vmem>>, vector<1x8x128xf32>,
    %c0_60 = arith.constant 0 : index
    %c0_61 = arith.constant 0 : index
    %241 = vector.load %arg5[%c0_60, %c0_61] : memref<8x32xf32, #tpu.memory_space<vmem>>, vector<8x32xf32>
    tpu.vector_store %arg5[%c0_60, %c0_61], %233 {strides = array<i32>} : memref<8x32xf32, #tpu.memory_space<vmem>>, vector<8x32xf32>,
    return
  }
  func.func @transform_0(%arg0: i32) -> (i32, i32, i32) {
    %c0_i32 = arith.constant 0 : i32
    %c0_i32_0 = arith.constant 0 : i32
    %c0_i32_1 = arith.constant 0 : i32
    return %c0_i32, %arg0, %c0_i32_0 : i32, i32, i32
  }
  func.func @transform_1(%arg0: i32) -> (i32, i32) {
    %c0_i32 = arith.constant 0 : i32
    %c0_i32_0 = arith.constant 0 : i32
    return %arg0, %c0_i32 : i32, i32
  }
  func.func @transform_2(%arg0: i32) -> (i32, i32) {
    %c0_i32 = arith.constant 0 : i32
    %c0_i32_0 = arith.constant 0 : i32
    %c0_i32_1 = arith.constant 0 : i32
    return %c0_i32, %c0_i32_0 : i32, i32
  }
  func.func @transform_3(%arg0: i32) -> (i32, i32, i32) {
    %c0_i32 = arith.constant 0 : i32
    %c0_i32_0 = arith.constant 0 : i32
    %c0_i32_1 = arith.constant 0 : i32
    return %c0_i32, %arg0, %c0_i32_0 : i32, i32, i32
  }
  func.func @transform_4(%arg0: i32) -> (i32, i32) {
    %c0_i32 = arith.constant 0 : i32
    %c0_i32_0 = arith.constant 0 : i32
    return %arg0, %c0_i32 : i32, i32
  }
}

</mosaic_0001>

<bundles_post_ra>
// kernel: decoder_forward.1
= control target key start
LH: loop header
LB: loop body
LE: loop exit
PB: predicated region body
PF: predicated region fallthrough
CT: control target
= control target key end

     0   :  { %v2119_v0 = vmov 0.0|0.0   ;;  %vm2120_vm0 = vmmov 0   ;;  %v2121_v4 = vmov 0.0   ;;  %vm52_vm1 = vcmask 326656   ;;  %s2122_s11 = smov 64   ;;  %s2123_s17 = smov 32   ;;  %s2471_s2 = inlined_call_operand.vmem [shape: f32[128,128], index: 2, kind: input, shape index: {}]   ;;  %s2472_s0 = inlined_call_operand.vmem [shape: f32[8,8,40], index: 0, kind: input, shape index: {}]   ;;  %s2473_s1 = inlined_call_operand.vmem [shape: f32[8,32], index: 1, kind: input, shape index: {}]   ;;  %s2474_s3 = inlined_call_operand.vmem [shape: f32[8,8,128], index: 3, kind: output, shape index: {0}]   ;;  %s2475_s4 = inlined_call_operand.vmem [shape: f32[8,32], index: 4, kind: output, shape index: {1}]  }
   0x1   :  { %1969 = vmatprep.subr.bf16.mxu1 %v2119_v0  ;;  %v16_v1 = vld [vmem:[%s2471_s2] sm:$0xff]  ;;  %v17_v2 = vld [vmem:[%s2471_s2 + $0x8] sm:$0xff]  ;;  %1793 = vmatprep.mubr.msk.f32.mxu1 %vm2120_vm0, %v2121_v4  ;;  %v22_v6 = vld [vmem:[%s2471_s2 + $0x30] sm:$0xff]  ;;  %vm183_vm2 = vcmask 261120  }
   0x2   :  { %v21_v3 = vld [vmem:[%s2471_s2 + $0x28] sm:$0xff]  ;;  %v1961_v5 = vpack.c.bf16 %v17_v2, %v16_v1  ;;  %v18_v7 = vld [vmem:[%s2471_s2 + $0x10] sm:$0xff]  ;;  %v19_v8 = vld [vmem:[%s2471_s2 + $0x18] sm:$0xff] }
   0x3   :  { %v2171_v9 = vpack.c.bf16 %v22_v6, %v21_v3  ;;  %v1965_v10 = vpack.c.bf16 %v19_v8, %v18_v7  ;;  %v23_v11 = vld [vmem:[%s2471_s2 + $0x38] sm:$0xff]  ;;  %v24_v12 = vld [vmem:[%s2471_s2 + $0x40] sm:$0xff]  ;;  %v1628_v15 = vld [vmem:[%s2471_s2 + $0x50] ss:$0 sm:$0xff] }
   0x4   :  { %1962 = vmatprep.subr.bf16.mxu0 %v1961_v5  ;;  %v40_v13 = vld [vmem:[%s2472_s0] sm:$0xff]  ;;  %v2183_v14 = vpack.c.bf16 %v24_v12, %v23_v11  ;;  %265 = vrot.lane.b32.xlu0 %v1628_v15, %s2122_s11  ;;  %v41_v18 = vld [vmem:[%s2472_s0 + $0x8] sm:$0xff]  ;;  %v25_v39 = vld [vmem:[%s2471_s2 + $0x58] sm:$0xff] }
   0x5   :  { %1971 = vmatpush3.bf16.msra.mxu1 %v2171_v9  ;;  %1964 = vmatpush3.bf16.msra.mxu0 %v1961_v5  ;;  %v20_v16 = vld [vmem:[%s2471_s2 + $0x20] sm:$0xff]  ;;  %v2216_v25 = vld [vmem:[%s2471_s2 + $0x48] ss:$0 sm:$0xff]  ;;  %v28_v43 = vld [vmem:[%s2471_s2 + $0x70] sm:$0xff] }
   0x6   :  { %1972 = vmatprep.subr.bf16.mxu1 %v2119_v0  ;;  %1966 = vmatprep.subr.bf16.mxu0 %v1965_v10  ;;  %v182_v17 = vld [vmem:[%s2473_s1] sm:$0xff]  ;;  %v27_v41 = vld [vmem:[%s2471_s2 + $0x68] sm:$0xff]  ;;  %v2265_v50 = vld [vmem:[%s2471_s2 + $0x78] ss:$0 sm:$0xff] }
   0x7   :  { %1773 = vmatprep.mubr.msk.f32.mxu0 %vm52_vm1, %v40_v13  ;;  %v26_v40 = vld [vmem:[%s2471_s2 + $0x60] sm:$0xff]  ;;  %v2237_v44 = vpack.c.bf16 %v28_v43, %v27_v41  ;;  %s2124_s2 = smov 96   ;;  %v42_v8 = vld [vmem:[%s2472_s0 + $0x10] sm:$0xff]  ;;  %v45_v12 = vld [vmem:[%s2472_s0 + $0x28] sm:$0xff] }
   0x8   :  { %v2231_v42 = vpack.c.bf16 %v26_v40, %v25_v39  ;;  %v44_v11 = vld [vmem:[%s2472_s0 + $0x20] sm:$0xff]  ;;  %v46_v13 = vld [vmem:[%s2472_s0 + $0x30] sm:$0xff]  ;;  %v47_v15 = vld [vmem:[%s2472_s0 + $0x38] sm:$0xff] }
   0x9   :  { %1974 = vmatpush3.bf16.msra.mxu1 %v2183_v14  ;;  %1968 = vmatpush3.bf16.msra.mxu0 %v1965_v10  ;;  %v43_v10 = vld [vmem:[%s2472_s0 + $0x18] sm:$0xff] }
   0xa   :  { %1771 = vmatprep.subr.mxu0 %v20_v16  ;;  %1975 = vmatprep.subr.bf16.mxu1 %v2119_v0 }
   0xc   :  { %1794 = vmatmul.mubr.msk.f32.vlgmr.msra.gmra.mrb[0].mxu1 %vm183_vm2, %v182_v17 }
   0xd   :  { %1772 = vmatpush3.msra.mxu0 %v20_v16  ;;  %1804 = vmatprep.mubr.msk.f32.mxu1 %vm2120_vm0, %v2121_v4 }
   0xe   :  { %1774 = vmatmul.mubr.msk.f32.vlgmr.msra.gmra.mrb[0].mxu0 %vm52_vm1, %v41_v18  ;;  %1987 = vmatprep.subr.bf16.mxu0 %v2119_v0 }
   0xf   :  { %1977 = vmatpush3.bf16.msra.mxu1 %v2231_v42  ;;  %1989 = vmatpush3.bf16.msra.mxu0 %v2231_v42 }
  0x10   :  { %1978 = vmatprep.subr.bf16.mxu1 %v2119_v0  ;;  %1990 = vmatprep.subr.bf16.mxu0 %v2119_v0 }
  0x11   :  { %1776 = vmatprep.mubr.msk.f32.mxu0 %vm52_vm1, %v42_v8 }
  0x12   :  { %1777 = vmatmul.mubr.msk.f32.gmra.mrb[2].mxu0 %vm52_vm1, %v43_v10 }
  0x13   :  { %1980 = vmatpush3.bf16.msra.mxu1 %v2237_v44  ;;  %1992 = vmatpush3.bf16.msra.mxu0 %v2237_v44 }
  0x14   :  { %1981 = vmatprep.subr.bf16.mxu1 %v2119_v0  ;;  %1999 = vmatprep.subr.bf16.mxu0 %v2119_v0 }
  0x15   :  { %1779 = vmatprep.mubr.msk.f32.mxu0 %vm52_vm1, %v44_v11 }
  0x16   :  { %1780 = vmatmul.mubr.msk.f32.gmra.mrb[4].mxu0 %vm52_vm1, %v45_v12 }
  0x17   :  { %1782 = vmatprep.mubr.msk.f32.mxu0 %vm52_vm1, %v46_v13 }
  0x1a   :  { %1783 = vmatmul.mubr.msk.f32.gmra.mrb[6].mxu0 %vm52_vm1, %v47_v15 }
  0x1b   :  { %1826 = vmatprep.mubr.msk.f32.mxu0 %vm2120_vm0, %v2121_v4 }
  0x76   :  { %v2207_v19 = vpop.permute.xlu0 %265 }
  0xdf   :  { %v253_v20 = vpop.f32.mrb[0].mxu1 }
  0xe0   :  { %v268_v21 = vadd.f32 %v2207_v19, %v253_v20  ;;  %v1795_v22 = vpop.f32.mrb[1].mxu1 }
  0xe1   :  { %v2210_v23 = vpop.f32.mrb[0].mxu0 }
  0xe2   :  { %270 = vrot.lane.b32.xlu0 %v268_v21, %s2122_s11  ;;  %v143_v24 = vpop.f32.mrb[1].mxu0  ;;  %v149_v58 = vadd.f32 %v2210_v23, %v2216_v25 }
  0xe3   :  { %v144_v26 = vadd.f32 %v2216_v25, %v143_v24 }
  0xe5   :  { %v257_v27 = vadd.f32 %v253_v20, %v144_v26  ;;  %v2305_v21 = vpop.f32.mrb[2].mxu0 }
  0xe6   :  { %v153_v22 = vpop.f32.mrb[3].mxu0 }
  0xe7   :  { %v1640_v28 = vmul.f32 -1.442695, %v257_v27 }
  0xe9   :  { %2071 = vpow2.f32 %v1640_v28  ;;  %v2307_v23 = vpop.f32.mrb[4].mxu0 }
  0xea   :  { %v2309_v24 = vpop.f32.mrb[5].mxu0 }
  0xf3   :  { %v2072_v29 = vpop.eup %2071 }
  0xf4   :  { %v261_v30 = vadd.f32 1.0, %v2072_v29 }
  0xf6   :  { %2073 = vrcp.f32 %v261_v30 }
 0x100   :  { %v2074_v31 = vpop.eup %2073 }
 0x154   :  { %v271_v32 = vpop.permute.xlu0 %270 }
 0x155   :  { %v273_v33 = vmul.f32 %v2074_v31, %v271_v32 }
 0x157   :  { %275 = vrot.lane.b32.xlu1 %v273_v33, %s2122_s11 }
 0x1c9   :  { %v276_v34 = vpop.permute.xlu1 %275 }
 0x1ca   :  { %v278_v35 = vadd.f32 %v276_v34, %v144_v26  ;;  %v2311_v26 = vpop.f32.mrb[6].mxu0 }
 0x1cb   :  { %v2313_v27 = vpop.f32.mrb[7].mxu0 }
 0x1cc   :  { %2075 = vtanh.f32 %v278_v35 }
 0x1d6   :  { %v2076_v36 = vpop.eup %2075 }
 0x1d7   :  { %281 = vrot.lane.b32.xlu1 %v2076_v36, %s2122_s11 }
 0x249   :  { %v282_v37 = vpop.permute.xlu1 %281 }
 0x24a   :  { %v284_v38 = vsub.f32 %v182_v17, %v282_v37 }
 0x24c   :  { %286 = vrot.lane.b32.xlu0 %v284_v38, %s2123_s17 }
 0x2be   :  { %v287_v45 = vpop.permute.xlu0 %286 }
 0x2bf   :  { %v289_v46 = vmul.f32 %v2074_v31, %v287_v45 }
 0x2c1   :  { %291 = vrot.lane.b32.xlu1 %v289_v46, %s2123_s17 }
 0x333   :  { %v292_v47 = vpop.permute.xlu1 %291 }
 0x334   :  { %v294_v48 = vadd.f32 %v2076_v36, %v292_v47  ;;  %v154_v36 = vadd.f32 %v2216_v25, %v153_v22 }
 0x336   :  { %296 = vrot.lane.b32.xlu0 %v294_v48, %s2122_s11 }
 0x3a8   :  { %v297_v49 = vpop.permute.xlu0 %296 }
 0x3a9   :  { %1805 = vmatmul.mubr.msk.f32.vlgmr.msra.gmra.mrb[2].mxu1 %vm183_vm2, %v297_v49 }
 0x3aa   :  { %1983 = vmatpush3.bf16.msra.mxu1 %v2171_v9  ;;  %1815 = vmatprep.mubr.msk.f32.mxu1 %vm2120_vm0, %v2121_v4 }
 0x3ab   :  { %1984 = vmatprep.subr.bf16.mxu1 %v2119_v0 }
 0x3ae   :  { %1986 = vmatpush3.bf16.msra.mxu1 %v2183_v14 }
 0x3af   :  { %1993 = vmatprep.subr.bf16.mxu1 %v2119_v0 }
 0x3b1   :  { %1816 = vmatmul.mubr.msk.f32.vlgmr.msra.gmra.mrb[4].mxu1 %vm183_vm2, %v297_v49 }
 0x3b2   :  { %1995 = vmatpush3.bf16.msra.mxu1 %v2171_v9  ;;  %1837 = vmatprep.mubr.msk.f32.mxu1 %vm2120_vm0, %v2121_v4 }
 0x3b3   :  { %1996 = vmatprep.subr.bf16.mxu1 %v2119_v0 }
 0x3b6   :  { %1998 = vmatpush3.bf16.msra.mxu1 %v2183_v14 }
 0x3b7   :  { %2005 = vmatprep.subr.bf16.mxu1 %v2119_v0 }
 0x47c   :  { %v366_v51 = vpop.f32.mrb[2].mxu1 }
 0x47d   :  { %v367_v52 = vadd.f32 %v2265_v50, %v366_v51  ;;  %v1806_v53 = vpop.f32.mrb[3].mxu1 }
 0x47f   :  { %v370_v54 = vmax.f32 %v367_v52, 0.0 }
 0x481   :  { %371 = vst [vmem:[%s2474_s3] sm:$0xff] %v370_v54 }
 0x484   :  { %v438_v55 = vpop.f32.mrb[4].mxu1 }
 0x485   :  { %v449_v56 = vadd.f32 %v438_v55, %v2207_v19  ;;  %v1817_v57 = vpop.f32.mrb[5].mxu1  ;;  %v442_v59 = vadd.f32 %v438_v55, %v149_v58 }
 0x487   :  { %451 = vrot.lane.b32.xlu1 %v449_v56, %s2122_s11  ;;  %v1643_v60 = vmul.f32 -1.442695, %v442_v59 }
 0x489   :  { %2077 = vpow2.f32 %v1643_v60 }
 0x493   :  { %v2078_v61 = vpop.eup %2077 }
 0x494   :  { %v446_v62 = vadd.f32 1.0, %v2078_v61 }
 0x496   :  { %2079 = vrcp.f32 %v446_v62 }
 0x4a0   :  { %v2080_v63 = vpop.eup %2079 }
 0x4f9   :  { %v452_v1 = vpop.permute.xlu1 %451 }
 0x4fa   :  { %v454_v2 = vmul.f32 %v2080_v63, %v452_v1 }
 0x4fc   :  { %456 = vrot.lane.b32.xlu0 %v454_v2, %s2122_s11 }
 0x56e   :  { %v457_v3 = vpop.permute.xlu0 %456 }
 0x56f   :  { %v459_v5 = vadd.f32 %v457_v3, %v149_v58 }
 0x571   :  { %2081 = vtanh.f32 %v459_v5 }
 0x57b   :  { %v2082_v6 = vpop.eup %2081 }
 0x57c   :  { %v461_v7 = vsub.f32 %v294_v48, %v2082_v6 }
 0x57e   :  { %463 = vrot.lane.b32.xlu1 %v461_v7, %s2124_s2 }
 0x5f0   :  { %v464_v16 = vpop.permute.xlu1 %463 }
 0x5f1   :  { %v466_v17 = vmul.f32 %v2080_v63, %v464_v16  ;;  %v159_v63 = vadd.f32 %v2305_v21, %v2216_v25 }
 0x5f3   :  { %468 = vrot.lane.b32.xlu0 %v466_v17, %s2123_s17 }
 0x665   :  { %v469_v18 = vpop.permute.xlu0 %468 }
 0x666   :  { %v471_v20 = vadd.f32 %v2082_v6, %v469_v18 }
 0x668   :  { %473 = vrot.lane.b32.xlu1 %v471_v20, %s2122_s11 }
 0x6da   :  { %v474_v28 = vpop.permute.xlu1 %473 }
 0x6db   :  { %1827 = vmatmul.mubr.msk.f32.vlgmr.msra.gmra.mrb[8].mxu0 %vm183_vm2, %v474_v28  ;;  %1838 = vmatmul.mubr.msk.f32.vlgmr.msra.gmra.mrb[6].mxu1 %vm183_vm2, %v474_v28 }
 0x6dc   :  { %2001 = vmatpush3.bf16.msra.mxu0 %v2231_v42  ;;  %2007 = vmatpush3.bf16.msra.mxu1 %v2171_v9 }
 0x6dd   :  { %2002 = vmatprep.subr.bf16.mxu0 %v2119_v0  ;;  %2008 = vmatprep.subr.bf16.mxu1 %v2119_v0 }
 0x6de   :  { %1848 = vmatprep.mubr.msk.f32.mxu0 %vm2120_vm0, %v2121_v4  ;;  %1859 = vmatprep.mubr.msk.f32.mxu1 %vm2120_vm0, %v2121_v4 }
 0x6e0   :  { %2004 = vmatpush3.bf16.msra.mxu0 %v2237_v44  ;;  %2010 = vmatpush3.bf16.msra.mxu1 %v2183_v14 }
 0x6e1   :  { %2011 = vmatprep.subr.bf16.mxu0 %v2119_v0  ;;  %2017 = vmatprep.subr.bf16.mxu1 %v2119_v0 }
 0x7ae   :  { %v543_v29 = vpop.f32.mrb[8].mxu0  ;;  %v616_v30 = vpop.f32.mrb[6].mxu1 }
 0x7af   :  { %v544_v31 = vadd.f32 %v2265_v50, %v543_v29  ;;  %v627_v32 = vadd.f32 %v616_v30, %v2207_v19  ;;  %v1828_v33 = vpop.f32.mrb[9].mxu0  ;;  %v1839_v34 = vpop.f32.mrb[7].mxu1  ;;  %v620_v37 = vadd.f32 %v616_v30, %v154_v36 }
 0x7b0   :  { %v164_v33 = vadd.f32 %v2216_v25, %v2309_v24 }
 0x7b1   :  { %v547_v35 = vmax.f32 %v544_v31, 0.0  ;;  %629 = vrot.lane.b32.xlu0 %v627_v32, %s2122_s11  ;;  %v1647_v38 = vmul.f32 -1.442695, %v620_v37 }
 0x7b3   :  { %1645 = vst [vmem:[%s2474_s3 + $0x8] sm:$0xff] %v547_v35  ;;  %2083 = vpow2.f32 %v1647_v38 }
 0x7bd   :  { %v2084_v39 = vpop.eup %2083 }
 0x7be   :  { %v624_v40 = vadd.f32 1.0, %v2084_v39 }
 0x7c0   :  { %2085 = vrcp.f32 %v624_v40 }
 0x7ca   :  { %v2086_v41 = vpop.eup %2085 }
 0x823   :  { %v630_v43 = vpop.permute.xlu0 %629 }
 0x824   :  { %v632_v45 = vmul.f32 %v2086_v41, %v630_v43 }
 0x826   :  { %634 = vrot.lane.b32.xlu1 %v632_v45, %s2122_s11 }
 0x898   :  { %v635_v46 = vpop.permute.xlu1 %634 }
 0x899   :  { %v637_v47 = vadd.f32 %v635_v46, %v154_v36 }
 0x89b   :  { %2087 = vtanh.f32 %v637_v47 }
 0x8a5   :  { %v2088_v48 = vpop.eup %2087 }
 0x8a6   :  { %v639_v49 = vsub.f32 %v471_v20, %v2088_v48 }
 0x8a8   :  { %641 = vrot.lane.b32.xlu0 %v639_v49, %s2124_s2 }
 0x91a   :  { %v642_v51 = vpop.permute.xlu0 %641 }
 0x91b   :  { %v644_v52 = vmul.f32 %v2086_v41, %v642_v51 }
 0x91d   :  { %646 = vrot.lane.b32.xlu1 %v644_v52, %s2123_s17 }
 0x98f   :  { %v647_v53 = vpop.permute.xlu1 %646 }
 0x990   :  { %v649_v54 = vadd.f32 %v2088_v48, %v647_v53 }
 0x992   :  { %651 = vrot.lane.b32.xlu0 %v649_v54, %s2122_s11 }
 0xa04   :  { %v652_v55 = vpop.permute.xlu0 %651 }
 0xa05   :  { %1849 = vmatmul.mubr.msk.f32.vlgmr.msra.gmra.mrb[10].mxu0 %vm183_vm2, %v652_v55  ;;  %1860 = vmatmul.mubr.msk.f32.vlgmr.msra.gmra.mrb[8].mxu1 %vm183_vm2, %v652_v55 }
 0xa06   :  { %2013 = vmatpush3.bf16.msra.mxu0 %v2231_v42  ;;  %2019 = vmatpush3.bf16.msra.mxu1 %v2171_v9 }
 0xa07   :  { %2014 = vmatprep.subr.bf16.mxu0 %v2119_v0  ;;  %2020 = vmatprep.subr.bf16.mxu1 %v2119_v0 }
 0xa08   :  { %1870 = vmatprep.mubr.msk.f32.mxu0 %vm2120_vm0, %v2121_v4  ;;  %1881 = vmatprep.mubr.msk.f32.mxu1 %vm2120_vm0, %v2121_v4 }
 0xa0a   :  { %2016 = vmatpush3.bf16.msra.mxu0 %v2237_v44  ;;  %2022 = vmatpush3.bf16.msra.mxu1 %v2183_v14 }
 0xa0b   :  { %2023 = vmatprep.subr.bf16.mxu0 %v2119_v0  ;;  %2029 = vmatprep.subr.bf16.mxu1 %v2119_v0 }
 0xad8   :  { %v721_v56 = vpop.f32.mrb[10].mxu0  ;;  %v794_v57 = vpop.f32.mrb[8].mxu1 }
 0xad9   :  { %v722_v58 = vadd.f32 %v2265_v50, %v721_v56  ;;  %v805_v59 = vadd.f32 %v794_v57, %v2207_v19  ;;  %v1850_v60 = vpop.f32.mrb[11].mxu0  ;;  %v1861_v61 = vpop.f32.mrb[9].mxu1  ;;  %v798_v1 = vadd.f32 %v794_v57, %v159_v63 }
 0xadb   :  { %v725_v62 = vmax.f32 %v722_v58, 0.0  ;;  %807 = vrot.lane.b32.xlu1 %v805_v59, %s2122_s11  ;;  %v1651_v2 = vmul.f32 -1.442695, %v798_v1  ;;  %v169_v59 = vadd.f32 %v2307_v23, %v2216_v25 }
 0xadd   :  { %1649 = vst [vmem:[%s2474_s3 + $0x10] sm:$0xff] %v725_v62  ;;  %2089 = vpow2.f32 %v1651_v2 }
 0xae7   :  { %v2090_v3 = vpop.eup %2089 }
 0xae8   :  { %v802_v5 = vadd.f32 1.0, %v2090_v3 }
 0xaea   :  { %2091 = vrcp.f32 %v802_v5 }
 0xaf4   :  { %v2092_v6 = vpop.eup %2091 }
 0xb4d   :  { %v808_v7 = vpop.permute.xlu1 %807 }
 0xb4e   :  { %v810_v8 = vmul.f32 %v2092_v6, %v808_v7 }
 0xb50   :  { %812 = vrot.lane.b32.xlu0 %v810_v8, %s2122_s11 }
 0xbc2   :  { %v813_v10 = vpop.permute.xlu0 %812 }
 0xbc3   :  { %v815_v11 = vadd.f32 %v813_v10, %v159_v63 }
 0xbc5   :  { %2093 = vtanh.f32 %v815_v11 }
 0xbcf   :  { %v2094_v12 = vpop.eup %2093 }
 0xbd0   :  { %v817_v13 = vsub.f32 %v649_v54, %v2094_v12 }
 0xbd2   :  { %819 = vrot.lane.b32.xlu1 %v817_v13, %s2124_s2 }
 0xc44   :  { %v820_v15 = vpop.permute.xlu1 %819 }
 0xc45   :  { %v822_v16 = vmul.f32 %v2092_v6, %v820_v15 }
 0xc47   :  { %824 = vrot.lane.b32.xlu0 %v822_v16, %s2123_s17 }
 0xcb9   :  { %v825_v17 = vpop.permute.xlu0 %824 }
 0xcba   :  { %v827_v18 = vadd.f32 %v2094_v12, %v825_v17 }
 0xcbc   :  { %829 = vrot.lane.b32.xlu1 %v827_v18, %s2122_s11 }
 0xd2e   :  { %v830_v20 = vpop.permute.xlu1 %829 }
 0xd2f   :  { %1871 = vmatmul.mubr.msk.f32.vlgmr.msra.gmra.mrb[12].mxu0 %vm183_vm2, %v830_v20  ;;  %1882 = vmatmul.mubr.msk.f32.vlgmr.msra.gmra.mrb[10].mxu1 %vm183_vm2, %v830_v20 }
 0xd30   :  { %2025 = vmatpush3.bf16.msra.mxu0 %v2231_v42  ;;  %2031 = vmatpush3.bf16.msra.mxu1 %v2171_v9 }
 0xd31   :  { %2026 = vmatprep.subr.bf16.mxu0 %v2119_v0  ;;  %2032 = vmatprep.subr.bf16.mxu1 %v2119_v0 }
 0xd32   :  { %1892 = vmatprep.mubr.msk.f32.mxu0 %vm2120_vm0, %v2121_v4  ;;  %1903 = vmatprep.mubr.msk.f32.mxu1 %vm2120_vm0, %v2121_v4 }
 0xd34   :  { %2028 = vmatpush3.bf16.msra.mxu0 %v2237_v44  ;;  %2034 = vmatpush3.bf16.msra.mxu1 %v2183_v14 }
 0xd35   :  { %2035 = vmatprep.subr.bf16.mxu0 %v2119_v0  ;;  %2041 = vmatprep.subr.bf16.mxu1 %v2119_v0 }
 0xe02   :  { %v899_v21 = vpop.f32.mrb[12].mxu0  ;;  %v972_v22 = vpop.f32.mrb[10].mxu1 }
 0xe03   :  { %v900_v28 = vadd.f32 %v2265_v50, %v899_v21  ;;  %v983_v29 = vadd.f32 %v972_v22, %v2207_v19  ;;  %v1872_v30 = vpop.f32.mrb[13].mxu0  ;;  %v1883_v31 = vpop.f32.mrb[11].mxu1  ;;  %v976_v34 = vadd.f32 %v972_v22, %v164_v33 }
 0xe05   :  { %v903_v32 = vmax.f32 %v900_v28, 0.0  ;;  %985 = vrot.lane.b32.xlu0 %v983_v29, %s2122_s11  ;;  %v1655_v35 = vmul.f32 -1.442695, %v976_v34 }
 0xe07   :  { %1653 = vst [vmem:[%s2474_s3 + $0x18] sm:$0xff] %v903_v32  ;;  %2095 = vpow2.f32 %v1655_v35 }
 0xe11   :  { %v2096_v36 = vpop.eup %2095 }
 0xe12   :  { %v980_v37 = vadd.f32 1.0, %v2096_v36 }
 0xe14   :  { %2097 = vrcp.f32 %v980_v37 }
 0xe1e   :  { %v2098_v38 = vpop.eup %2097 }
 0xe77   :  { %v986_v39 = vpop.permute.xlu0 %985 }
 0xe78   :  { %v988_v40 = vmul.f32 %v2098_v38, %v986_v39 }
 0xe7a   :  { %990 = vrot.lane.b32.xlu1 %v988_v40, %s2122_s11 }
 0xeec   :  { %v991_v41 = vpop.permute.xlu1 %990 }
 0xeed   :  { %v993_v43 = vadd.f32 %v991_v41, %v164_v33 }
 0xeef   :  { %2099 = vtanh.f32 %v993_v43 }
 0xef9   :  { %v2100_v45 = vpop.eup %2099 }
 0xefa   :  { %v995_v46 = vsub.f32 %v827_v18, %v2100_v45 }
 0xefc   :  { %997 = vrot.lane.b32.xlu0 %v995_v46, %s2124_s2 }
 0xf6e   :  { %v998_v47 = vpop.permute.xlu0 %997 }
 0xf6f   :  { %v1000_v24 = vmul.f32 %v2098_v38, %v998_v47 }
 0xf71   :  { %1002 = vrot.lane.b32.xlu1 %v1000_v24, %s2123_s17 }
 0xfe3   :  { %v1003_v48 = vpop.permute.xlu1 %1002 }
 0xfe4   :  { %v1005_v49 = vadd.f32 %v2100_v45, %v1003_v48 }
 0xfe6   :  { %1007 = vrot.lane.b32.xlu0 %v1005_v49, %s2122_s11 }
0x1058   :  { %v1008_v51 = vpop.permute.xlu0 %1007 }
0x1059   :  { %1893 = vmatmul.mubr.msk.f32.vlgmr.msra.gmra.mrb[14].mxu0 %vm183_vm2, %v1008_v51  ;;  %1904 = vmatmul.mubr.msk.f32.vlgmr.msra.gmra.mrb[12].mxu1 %vm183_vm2, %v1008_v51 }
0x105a   :  { %2037 = vmatpush3.bf16.msra.mxu0 %v2231_v42  ;;  %2043 = vmatpush3.bf16.msra.mxu1 %v2171_v9 }
0x105b   :  { %2038 = vmatprep.subr.bf16.mxu0 %v2119_v0  ;;  %2044 = vmatprep.subr.bf16.mxu1 %v2119_v0 }
0x105c   :  { %1914 = vmatprep.mubr.msk.f32.mxu0 %vm2120_vm0, %v2121_v4  ;;  %1925 = vmatprep.mubr.msk.f32.mxu1 %vm2120_vm0, %v2121_v4 }
0x105e   :  { %2040 = vmatpush3.bf16.msra.mxu0 %v2237_v44  ;;  %2046 = vmatpush3.bf16.msra.mxu1 %v2183_v14 }
0x105f   :  { %2047 = vmatprep.subr.bf16.mxu0 %v2119_v0  ;;  %2053 = vmatprep.subr.bf16.mxu1 %v2119_v0 }
0x112c   :  { %v1077_v52 = vpop.f32.mrb[14].mxu0  ;;  %v1150_v53 = vpop.f32.mrb[12].mxu1 }
0x112d   :  { %v1078_v54 = vadd.f32 %v2265_v50, %v1077_v52  ;;  %v1161_v55 = vadd.f32 %v1150_v53, %v2207_v19  ;;  %v1894_v56 = vpop.f32.mrb[15].mxu0  ;;  %v1905_v57 = vpop.f32.mrb[13].mxu1  ;;  %v1154_v60 = vadd.f32 %v1150_v53, %v169_v59 }
0x112f   :  { %v1081_v58 = vmax.f32 %v1078_v54, 0.0  ;;  %1163 = vrot.lane.b32.xlu1 %v1161_v55, %s2122_s11  ;;  %v1659_v61 = vmul.f32 -1.442695, %v1154_v60 }
0x1131   :  { %1657 = vst [vmem:[%s2474_s3 + $0x20] sm:$0xff] %v1081_v58  ;;  %2101 = vpow2.f32 %v1659_v61 }
0x113b   :  { %v2102_v62 = vpop.eup %2101 }
0x113c   :  { %v1158_v63 = vadd.f32 1.0, %v2102_v62 }
0x113e   :  { %2103 = vrcp.f32 %v1158_v63 }
0x1148   :  { %v2104_v1 = vpop.eup %2103 }
0x11a1   :  { %v1164_v2 = vpop.permute.xlu1 %1163 }
0x11a2   :  { %v1166_v3 = vmul.f32 %v2104_v1, %v1164_v2 }
0x11a4   :  { %1168 = vrot.lane.b32.xlu0 %v1166_v3, %s2122_s11 }
0x1216   :  { %v1169_v5 = vpop.permute.xlu0 %1168 }
0x1217   :  { %v1171_v6 = vadd.f32 %v1169_v5, %v169_v59 }
0x1219   :  { %2105 = vtanh.f32 %v1171_v6 }
0x1223   :  { %v2106_v7 = vpop.eup %2105 }
0x1224   :  { %v1173_v8 = vsub.f32 %v1005_v49, %v2106_v7 }
0x1226   :  { %1175 = vrot.lane.b32.xlu1 %v1173_v8, %s2124_s2 }
0x1298   :  { %v1176_v10 = vpop.permute.xlu1 %1175 }
0x1299   :  { %v1178_v23 = vmul.f32 %v2104_v1, %v1176_v10 }
0x129b   :  { %1180 = vrot.lane.b32.xlu0 %v1178_v23, %s2123_s17 }
0x130d   :  { %v1181_v11 = vpop.permute.xlu0 %1180 }
0x130e   :  { %v1183_v12 = vadd.f32 %v2106_v7, %v1181_v11 }
0x1310   :  { %1185 = vrot.lane.b32.xlu1 %v1183_v12, %s2122_s11 }
0x1382   :  { %v1186_v13 = vpop.permute.xlu1 %1185 }
0x1383   :  { %1915 = vmatmul.mubr.msk.f32.vlgmr.msra.gmra.mrb[16].mxu0 %vm183_vm2, %v1186_v13  ;;  %1926 = vmatmul.mubr.msk.f32.vlgmr.msra.gmra.mrb[14].mxu1 %vm183_vm2, %v1186_v13 }
0x1384   :  { %2049 = vmatpush3.bf16.msra.mxu0 %v2231_v42  ;;  %2055 = vmatpush3.bf16.msra.mxu1 %v2171_v9 }
0x1385   :  { %2050 = vmatprep.subr.bf16.mxu0 %v2119_v0  ;;  %2056 = vmatprep.subr.bf16.mxu1 %v2119_v0 }
0x1386   :  { %1936 = vmatprep.mubr.msk.f32.mxu0 %vm2120_vm0, %v2121_v4  ;;  %1947 = vmatprep.mubr.msk.f32.mxu1 %vm2120_vm0, %v2121_v4 }
0x1388   :  { %2052 = vmatpush3.bf16.msra.mxu0 %v2237_v44  ;;  %2058 = vmatpush3.bf16.msra.mxu1 %v2183_v14  ;;  %v174_v14 = vadd.f32 %v2216_v25, %v2313_v27 }
0x1389   :  { %2059 = vmatprep.subr.bf16.mxu0 %v2119_v0 }
0x1456   :  { %v1255_v15 = vpop.f32.mrb[16].mxu0  ;;  %v1328_v16 = vpop.f32.mrb[14].mxu1 }
0x1457   :  { %v1256_v9 = vadd.f32 %v2265_v50, %v1255_v15  ;;  %v1339_v17 = vadd.f32 %v1328_v16, %v2207_v19  ;;  %v1916_v18 = vpop.f32.mrb[17].mxu0  ;;  %v1927_v20 = vpop.f32.mrb[15].mxu1  ;;  %v1332_v22 = vadd.f32 %v1328_v16, %v174_v14 }
0x1459   :  { %v1259_v21 = vmax.f32 %v1256_v9, 0.0  ;;  %1341 = vrot.lane.b32.xlu0 %v1339_v17, %s2122_s11  ;;  %v1663_v28 = vmul.f32 -1.442695, %v1332_v22 }
0x145b   :  { %1661 = vst [vmem:[%s2474_s3 + $0x28] sm:$0xff] %v1259_v21  ;;  %2107 = vpow2.f32 %v1663_v28 }
0x1465   :  { %v2108_v29 = vpop.eup %2107 }
0x1466   :  { %v1336_v30 = vadd.f32 1.0, %v2108_v29 }
0x1468   :  { %2109 = vrcp.f32 %v1336_v30 }
0x1472   :  { %v2110_v31 = vpop.eup %2109 }
0x14cb   :  { %v1342_v32 = vpop.permute.xlu0 %1341 }
0x14cc   :  { %v1344_v33 = vmul.f32 %v2110_v31, %v1342_v32 }
0x14ce   :  { %1346 = vrot.lane.b32.xlu1 %v1344_v33, %s2122_s11 }
0x1540   :  { %v1347_v34 = vpop.permute.xlu1 %1346 }
0x1541   :  { %v1349_v35 = vadd.f32 %v1347_v34, %v174_v14 }
0x1543   :  { %2111 = vtanh.f32 %v1349_v35 }
0x154d   :  { %v2112_v36 = vpop.eup %2111 }
0x154e   :  { %v1351_v37 = vsub.f32 %v1183_v12, %v2112_v36 }
0x1550   :  { %1353 = vrot.lane.b32.xlu0 %v1351_v37, %s2124_s2 }
0x15c2   :  { %v1354_v38 = vpop.permute.xlu0 %1353 }
0x15c3   :  { %v1356_v27 = vmul.f32 %v2110_v31, %v1354_v38 }
0x15c5   :  { %1358 = vrot.lane.b32.xlu1 %v1356_v27, %s2123_s17 }
0x1637   :  { %v1359_v39 = vpop.permute.xlu1 %1358 }
0x1638   :  { %v1361_v40 = vadd.f32 %v2112_v36, %v1359_v39 }
0x163a   :  { %1363 = vrot.lane.b32.xlu0 %v1361_v40, %s2122_s11 }
0x16ac   :  { %v1364_v41 = vpop.permute.xlu0 %1363 }
0x16ad   :  { %1937 = vmatmul.mubr.msk.f32.vlgmr.msra.gmra.mrb[18].mxu0 %vm183_vm2, %v1364_v41  ;;  %1948 = vmatmul.mubr.msk.f32.vlgmr.msra.gmra.mrb[16].mxu1 %vm183_vm2, %v1364_v41 }
0x16ae   :  { %2061 = vmatpush3.bf16.msra.mxu0 %v2231_v42  ;;  %1958 = vmatprep.mubr.msk.f32.mxu0 %vm2120_vm0, %v2121_v4 }
0x16af   :  { %2062 = vmatprep.subr.bf16.mxu0 %v2119_v0  ;;  %v179_v0 = vadd.f32 %v2311_v26, %v2216_v25 }
0x16b2   :  { %2064 = vmatpush3.bf16.msra.mxu0 %v2237_v44 }
0x1780   :  { %v1433_v43 = vpop.f32.mrb[18].mxu0  ;;  %v1506_v45 = vpop.f32.mrb[16].mxu1 }
0x1781   :  { %v1434_v46 = vadd.f32 %v2265_v50, %v1433_v43  ;;  %v1517_v47 = vadd.f32 %v1506_v45, %v2207_v19  ;;  %v1938_v24 = vpop.f32.mrb[19].mxu0  ;;  %v1949_v48 = vpop.f32.mrb[17].mxu1  ;;  %v1510_v4 = vadd.f32 %v1506_v45, %v179_v0 }
0x1783   :  { %v1437_v49 = vmax.f32 %v1434_v46, 0.0  ;;  %1519 = vrot.lane.b32.xlu1 %v1517_v47, %s2122_s11  ;;  %v1667_v42 = vmul.f32 -1.442695, %v1510_v4 }
0x1785   :  { %1665 = vst [vmem:[%s2474_s3 + $0x30] sm:$0xff] %v1437_v49  ;;  %2113 = vpow2.f32 %v1667_v42 }
0x178f   :  { %v2114_v44 = vpop.eup %2113 }
0x1790   :  { %v1514_v51 = vadd.f32 1.0, %v2114_v44 }
0x1792   :  { %2115 = vrcp.f32 %v1514_v51 }
0x179c   :  { %v2116_v52 = vpop.eup %2115 }
0x17f5   :  { %v1520_v19 = vpop.permute.xlu1 %1519 }
0x17f6   :  { %v1522_v53 = vmul.f32 %v2116_v52, %v1520_v19 }
0x17f8   :  { %1524 = vrot.lane.b32.xlu0 %v1522_v53, %s2122_s11 }
0x186a   :  { %v1525_v54 = vpop.permute.xlu0 %1524 }
0x186b   :  { %v1527_v55 = vadd.f32 %v1525_v54, %v179_v0 }
0x186d   :  { %2117 = vtanh.f32 %v1527_v55 }
0x1877   :  { %v2118_v56 = vpop.eup %2117 }
0x1878   :  { %v1529_v57 = vsub.f32 %v1361_v40, %v2118_v56 }
0x187a   :  { %1531 = vrot.lane.b32.xlu1 %v1529_v57, %s2124_s2 }
0x18ec   :  { %v1532_v58 = vpop.permute.xlu1 %1531 }
0x18ed   :  { %v1534_v25 = vmul.f32 %v2116_v52, %v1532_v58 }
0x18ef   :  { %1536 = vrot.lane.b32.xlu0 %v1534_v25, %s2123_s17 }
0x1961   :  { %v1537_v26 = vpop.permute.xlu0 %1536 }
0x1962   :  { %v1539_v59 = vadd.f32 %v2118_v56, %v1537_v26 }
0x1964   :  { %1541 = vrot.lane.b32.xlu1 %v1539_v59, %s2122_s11 }
0x19d6   :  { %v1542_v60 = vpop.permute.xlu1 %1541 }
0x19d7   :  { %1619 = vst.msk [vmem:[%s2475_s4] sm:$0xff] %vm183_vm2, %v1542_v60  ;;  %1959 = vmatmul.mubr.msk.f32.vlgmr.msra.gmra.mrb[20].mxu0 %vm183_vm2, %v1542_v60 }
0x1aaa   :  { %v1611_v61 = vpop.f32.mrb[20].mxu0 }
0x1aab   :  { %v1612_v62 = vadd.f32 %v2265_v50, %v1611_v61  ;;  %v1960_v63 = vpop.f32.mrb[21].mxu0 }
0x1aad   :  { %v1615_v1 = vmax.f32 %v1612_v62, 0.0 }
0x1aaf   :  { %1669 = vst [vmem:[%s2474_s3 + $0x38] sm:$0xff] %v1615_v1 }

</bundles_post_ra>
